<compile_context>
chip_gen: v5e
topology: v5e:2x2
jax: 0.10.0
libtpu: 0.0.40
codegen_flags: <defaults>
</compile_context>

<pallas_src>
import jax
import jax.numpy as jnp
from jax.experimental import pallas as pl
from jax.experimental.pallas import tpu as pltpu

LN_EPS = 1e-5


def _embed_ln_kernel(ids_ref,        # (B*S,) int32  SMEM (scalar prefetch)
                     seg_ids_ref,    # (S, 1)  int32 VMEM
                     pos_ref,        # (S, D)  f32   VMEM
                     seg_tab_ref,    # (2, D)  f32   VMEM
                     gamma_ref,      # (1, D)  f32   VMEM
                     beta_ref,       # (1, D)  f32   VMEM
                     tok_hbm_ref,    # (vocab, D) f32  HBM (pl.ANY)
                     out_ref,        # (S, D)  f32   VMEM
                     tok_buf,        # (2*S, D) f32  VMEM scratch (2 slots)
                     sem):           # (2,) DMA semaphores (one per slot)
    b = pl.program_id(0)
    nb = pl.num_programs(0)
    S, D = out_ref.shape

    def issue_gathers(step, slot):
        # Issue S per-row copies (HBM token table -> VMEM slot).  All are in
        # flight at once; completion is drained by one coalesced wait on the
        # slot's semaphore.  Unrolled so id loads / descriptor pushes overlap.
        base = pl.multiple_of(slot * S, S)

        def issue(s, carry):
            tok_id = ids_ref[step * S + s]
            pltpu.make_async_copy(
                tok_hbm_ref.at[pl.ds(tok_id, 1), :],
                tok_buf.at[pl.ds(base + s, 1), :],
                sem.at[slot],
            ).start()
            return carry

        jax.lax.fori_loop(0, S, issue, 0, unroll=min(8, S))

    # --- prime the pipeline: first grid step issues its own gathers ---------
    @pl.when(b == 0)
    def _():
        issue_gathers(0, 0)

    # --- token-independent work, hoisted above the DMA wait ------------------
    seg = jnp.where(seg_ids_ref[...] == 0,
                    seg_tab_ref[0:1, :], seg_tab_ref[1:2, :])     # (S, D)
    ps = pos_ref[...] + seg                                       # (S, D)

    # --- wait for this step's slot with a single coalesced descriptor --------
    slot = jax.lax.rem(b, 2)
    base = pl.multiple_of(slot * S, S)
    pltpu.make_async_copy(
        tok_hbm_ref.at[pl.ds(0, S), :],       # dummy src: only byte count matters
        tok_buf.at[pl.ds(base, S), :],        # S*D*4 bytes == S row copies
        sem.at[slot],
    ).wait()

    # --- prefetch next sequence's token rows into the other slot -------------
    @pl.when(b + 1 < nb)
    def _():
        issue_gathers(b + 1, jax.lax.rem(b + 1, 2))

    # --- sum embeddings + fused LayerNorm ------------------------------------
    x = tok_buf[pl.ds(base, S), :] + ps
    mean = jnp.mean(x, axis=-1, keepdims=True)
    meansq = jnp.mean(x * x, axis=-1, keepdims=True)
    var = meansq - mean * mean                       # one-pass statistics
    inv = jax.lax.rsqrt(var + LN_EPS)
    y = (x - mean) * inv * gamma_ref[...] + beta_ref[...]
    out_ref[...] = y.astype(out_ref.dtype)
    # Dropout (eval mode) = identity.


def bert_embedding_forward(input_ids, segment_ids, params):
    """input_ids, segment_ids: (B, S) int32.  Returns (B, S, d_model) float32."""
    tok_tab = params["token_embeddings"]       # (vocab, D)
    pos_tab = params["position_embeddings"]    # (max_seq, D)
    seg_tab = params["segment_embeddings"]     # (2, D)
    gamma = params["ln_gamma"].reshape(1, -1)  # (1, D)
    beta = params["ln_beta"].reshape(1, -1)    # (1, D)

    B, S = input_ids.shape
    D = tok_tab.shape[1]

    if segment_ids is None:
        segment_ids = jnp.zeros_like(input_ids)

    ids_flat = input_ids.reshape(B * S).astype(jnp.int32)   # scalar prefetch (SMEM)
    seg3 = segment_ids.astype(jnp.int32).reshape(B, S, 1)   # per-row select input
    pos = pos_tab[:S]                                        # contiguous (S, D)

    grid_spec = pltpu.PrefetchScalarGridSpec(
        num_scalar_prefetch=1,
        grid=(B,),
        in_specs=[
            # segment ids for this sequence: (S, 1) after squeezing batch dim
            pl.BlockSpec((None, S, 1), lambda b, ids: (b, 0, 0)),
            # position table rows 0..S-1: constant block index, reused every step
            pl.BlockSpec((S, D), lambda b, ids: (0, 0)),
            # tiny 2-row segment table, resident
            pl.BlockSpec((2, D), lambda b, ids: (0, 0)),
            # layernorm gamma / beta, resident
            pl.BlockSpec((1, D), lambda b, ids: (0, 0)),
            pl.BlockSpec((1, D), lambda b, ids: (0, 0)),
            # token table stays in HBM; gathered manually with async copies
            pl.BlockSpec(memory_space=pl.ANY),
        ],
        out_specs=pl.BlockSpec((None, S, D), lambda b, ids: (b, 0, 0)),
        scratch_shapes=[
            pltpu.VMEM((2 * S, D), jnp.float32),   # double-buffered gathered rows
            pltpu.SemaphoreType.DMA((2,)),          # one DMA sem per slot
        ],
    )

    elem_bytes = 4
    # Rough per-core VMEM budget (double-buffered in/out blocks + gather slots).
    vmem_est = elem_bytes * (2 * S * D        # pos (double-buffered block)
                             + 2 * S * D      # out (double-buffered block)
                             + 2 * S * D      # tok_buf slots
                             + 4 * D + 2 * S) + (1 << 20)
    vmem_limit = None
    if vmem_est > 24 * 1024 * 1024:
        # Long sequences: raise the scoped-VMEM limit with headroom (or S-tile).
        vmem_limit = min(int(vmem_est * 1.5), 96 * 1024 * 1024)

    cost = pl.CostEstimate(
        flops=int(10 * B * S * D),
        transcendentals=int(B * S),
        bytes_accessed=int((2 * B * S * D + S * D + 4 * D) * elem_bytes),
    )

    out = pl.pallas_call(
        _embed_ln_kernel,
        out_shape=jax.ShapeDtypeStruct((B, S, D), jnp.float32),
        grid_spec=grid_spec,
        compiler_params=pltpu.CompilerParams(
            # Cross-step gather prefetch (primed only at b == 0) makes the
            # batch axis carry a dependency -> declare it "arbitrary"
            # (sequential).  Measured cost vs "parallel" on single-TC chips
            # is ~0.
            dimension_semantics=("arbitrary",),
            vmem_limit_bytes=vmem_limit,
        ),
        cost_estimate=cost,
    )(ids_flat, seg3, pos, seg_tab, gamma, beta, tok_tab)

    return out


def init_params(key, vocab_size, d_model, max_seq_length):
    k1, k2, k3 = jax.random.split(key, 3)
    return {
        # nn.Embedding default init: N(0, 1)
        "token_embeddings": jax.random.normal(k1, (vocab_size, d_model), jnp.float32),
        "position_embeddings": jax.random.normal(k2, (max_seq_length, d_model), jnp.float32),
        "segment_embeddings": jax.random.normal(k3, (2, d_model), jnp.float32),
        # nn.LayerNorm default init
        "ln_gamma": jnp.ones((d_model,), jnp.float32),
        "ln_beta": jnp.zeros((d_model,), jnp.float32),
    }


def reference_forward(input_ids, segment_ids, params):
    B, S = input_ids.shape
    pos_ids = jnp.arange(S)
    if segment_ids is None:
        segment_ids = jnp.zeros_like(input_ids)
    x = (params["token_embeddings"][input_ids]
         + params["position_embeddings"][pos_ids][None, :, :]
         + params["segment_embeddings"][segment_ids])
    mean = x.mean(-1, keepdims=True)
    var = ((x - mean) ** 2).mean(-1, keepdims=True)
    return (x - mean) / jnp.sqrt(var + LN_EPS) * params["ln_gamma"] + params["ln_beta"]


if __name__ == "__main__":
    vocab_size = 50
    d_model = 32
    max_seq_length = 16
    B, S = 2, 8

    key = jax.random.PRNGKey(0)
    kp, ki, ks = jax.random.split(key, 3)
    params = init_params(kp, vocab_size, d_model, max_seq_length)

    input_ids = jax.random.randint(ki, (B, S), 0, vocab_size, dtype=jnp.int32)
    segment_ids = jax.random.randint(ks, (B, S), 0, 2, dtype=jnp.int32)

    out = bert_embedding_forward(input_ids, segment_ids, params)
    out = jax.block_until_ready(out)

    ref = reference_forward(input_ids, segment_ids, params)
    assert out.shape == (B, S, d_model)
    assert jnp.allclose(out, ref, atol=1e-4, rtol=1e-4), "mismatch vs reference"

    print("KERNEL_OK")
</pallas_src>

<mosaic_0001>
module attributes {stable_mosaic.version = 11 : i64} {
  func.func @_embed_ln_kernel(%arg0: i32, %arg1: memref<16xi32, #tpu.memory_space<smem>>, %arg2: memref<1x8x1xi32, #tpu.memory_space<vmem>>, %arg3: memref<8x32xf32, #tpu.memory_space<vmem>>, %arg4: memref<2x32xf32, #tpu.memory_space<vmem>>, %arg5: memref<1x32xf32, #tpu.memory_space<vmem>>, %arg6: memref<1x32xf32, #tpu.memory_space<vmem>>, %arg7: memref<50x32xf32, #tpu.memory_space<any>>, %arg8: memref<1x8x32xf32, #tpu.memory_space<vmem>>, %arg9: memref<16x32xf32, #tpu.memory_space<vmem>>, %arg10: memref<2x!tpu.dma_semaphore, #tpu.memory_space<semaphore_mem>>) attributes {dimension_semantics = [#tpu.dimension_semantics<arbitrary>], iteration_bounds = array<i64: 2>, scalar_prefetch = 1 : i64, scratch_operands = 2 : i64, tpu.core_type = #tpu.core_type<tc>, window_params = [{transform_indices = @transform_0, window_bounds = array<i64: 1, 8, 1>}, {pipeline_mode = #tpu.pipeline_mode<synchronous>, transform_indices = @transform_1, window_bounds = array<i64: 8, 32>}, {pipeline_mode = #tpu.pipeline_mode<synchronous>, transform_indices = @transform_2, window_bounds = array<i64: 2, 32>}, {pipeline_mode = #tpu.pipeline_mode<synchronous>, transform_indices = @transform_3, window_bounds = array<i64: 1, 32>}, {pipeline_mode = #tpu.pipeline_mode<synchronous>, transform_indices = @transform_4, window_bounds = array<i64: 1, 32>}, {}, {transform_indices = @transform_6, window_bounds = array<i64: 1, 8, 32>}]} {
    %c0_i32 = arith.constant 0 : i32
    %0 = arith.cmpi eq, %arg0, %c0_i32 : i32
    %1 = arith.extui %0 : i1 to i32
    %c0_i32_0 = arith.constant 0 : i32
    %2 = arith.cmpi ne, %1, %c0_i32_0 : i32
    scf.if %2 {
      %c0_i32_26 = arith.constant 0 : i32
      %59 = tpu.assume_multiple %c0_i32_26, 8 : i32
      %c0_i32_27 = arith.constant 0 : i32
      %c0_i32_28 = arith.constant 0 : i32
      %60 = arith.addi %c0_i32_28, %c0_i32_27 : i32
      %61 = arith.index_cast %60 : i32 to index
      %62 = memref.load %arg1[%61] : memref<16xi32, #tpu.memory_space<smem>>
      %63 = arith.addi %59, %c0_i32_27 : i32
      %c0_i32_29 = arith.constant 0 : i32
      %c0_i32_30 = arith.constant 0 : i32
      %64 = tpu.memref_slice %arg7[%62, %c0_i32_30] : memref<50x32xf32, #tpu.memory_space<any>> -> memref<1x32xf32, #tpu.memory_space<any>>
      %c0_i32_31 = arith.constant 0 : i32
      %65 = tpu.memref_slice %arg9[%63, %c0_i32_31] : memref<16x32xf32, #tpu.memory_space<vmem>> -> memref<1x32xf32, #tpu.memory_space<vmem>>
      %66 = tpu.memref_slice %arg10[%c0_i32_29] : memref<2x!tpu.dma_semaphore, #tpu.memory_space<semaphore_mem>> -> memref<1x!tpu.dma_semaphore, #tpu.memory_space<semaphore_mem>>
      %67 = tpu.memref_squeeze %66 : memref<1x!tpu.dma_semaphore, #tpu.memory_space<semaphore_mem>> -> memref<!tpu.dma_semaphore, #tpu.memory_space<semaphore_mem>>
      tpu.enqueue_dma source(%64 : memref<1x32xf32, #tpu.memory_space<any>>) target(%65 : memref<1x32xf32, #tpu.memory_space<vmem>>) target_semaphore(%67 : memref<!tpu.dma_semaphore, #tpu.memory_space<semaphore_mem>>)
      %c1_i32_32 = arith.constant 1 : i32
      %c0_i32_33 = arith.constant 0 : i32
      %68 = arith.addi %c0_i32_33, %c1_i32_32 : i32
      %69 = arith.index_cast %68 : i32 to index
      %70 = memref.load %arg1[%69] : memref<16xi32, #tpu.memory_space<smem>>
      %71 = arith.addi %59, %c1_i32_32 : i32
      %c0_i32_34 = arith.constant 0 : i32
      %c0_i32_35 = arith.constant 0 : i32
      %72 = tpu.memref_slice %arg7[%70, %c0_i32_35] : memref<50x32xf32, #tpu.memory_space<any>> -> memref<1x32xf32, #tpu.memory_space<any>>
      %c0_i32_36 = arith.constant 0 : i32
      %73 = tpu.memref_slice %arg9[%71, %c0_i32_36] : memref<16x32xf32, #tpu.memory_space<vmem>> -> memref<1x32xf32, #tpu.memory_space<vmem>>
      %74 = tpu.memref_slice %arg10[%c0_i32_34] : memref<2x!tpu.dma_semaphore, #tpu.memory_space<semaphore_mem>> -> memref<1x!tpu.dma_semaphore, #tpu.memory_space<semaphore_mem>>
      %75 = tpu.memref_squeeze %74 : memref<1x!tpu.dma_semaphore, #tpu.memory_space<semaphore_mem>> -> memref<!tpu.dma_semaphore, #tpu.memory_space<semaphore_mem>>
      tpu.enqueue_dma source(%72 : memref<1x32xf32, #tpu.memory_space<any>>) target(%73 : memref<1x32xf32, #tpu.memory_space<vmem>>) target_semaphore(%75 : memref<!tpu.dma_semaphore, #tpu.memory_space<semaphore_mem>>)
      %c2_i32_37 = arith.constant 2 : i32
      %c0_i32_38 = arith.constant 0 : i32
      %76 = arith.addi %c0_i32_38, %c2_i32_37 : i32
      %77 = arith.index_cast %76 : i32 to index
      %78 = memref.load %arg1[%77] : memref<16xi32, #tpu.memory_space<smem>>
      %79 = arith.addi %59, %c2_i32_37 : i32
      %c0_i32_39 = arith.constant 0 : i32
      %c0_i32_40 = arith.constant 0 : i32
      %80 = tpu.memref_slice %arg7[%78, %c0_i32_40] : memref<50x32xf32, #tpu.memory_space<any>> -> memref<1x32xf32, #tpu.memory_space<any>>
      %c0_i32_41 = arith.constant 0 : i32
      %81 = tpu.memref_slice %arg9[%79, %c0_i32_41] : memref<16x32xf32, #tpu.memory_space<vmem>> -> memref<1x32xf32, #tpu.memory_space<vmem>>
      %82 = tpu.memref_slice %arg10[%c0_i32_39] : memref<2x!tpu.dma_semaphore, #tpu.memory_space<semaphore_mem>> -> memref<1x!tpu.dma_semaphore, #tpu.memory_space<semaphore_mem>>
      %83 = tpu.memref_squeeze %82 : memref<1x!tpu.dma_semaphore, #tpu.memory_space<semaphore_mem>> -> memref<!tpu.dma_semaphore, #tpu.memory_space<semaphore_mem>>
      tpu.enqueue_dma source(%80 : memref<1x32xf32, #tpu.memory_space<any>>) target(%81 : memref<1x32xf32, #tpu.memory_space<vmem>>) target_semaphore(%83 : memref<!tpu.dma_semaphore, #tpu.memory_space<semaphore_mem>>)
      %c3_i32 = arith.constant 3 : i32
      %c0_i32_42 = arith.constant 0 : i32
      %84 = arith.addi %c0_i32_42, %c3_i32 : i32
      %85 = arith.index_cast %84 : i32 to index
      %86 = memref.load %arg1[%85] : memref<16xi32, #tpu.memory_space<smem>>
      %87 = arith.addi %59, %c3_i32 : i32
      %c0_i32_43 = arith.constant 0 : i32
      %c0_i32_44 = arith.constant 0 : i32
      %88 = tpu.memref_slice %arg7[%86, %c0_i32_44] : memref<50x32xf32, #tpu.memory_space<any>> -> memref<1x32xf32, #tpu.memory_space<any>>
      %c0_i32_45 = arith.constant 0 : i32
      %89 = tpu.memref_slice %arg9[%87, %c0_i32_45] : memref<16x32xf32, #tpu.memory_space<vmem>> -> memref<1x32xf32, #tpu.memory_space<vmem>>
      %90 = tpu.memref_slice %arg10[%c0_i32_43] : memref<2x!tpu.dma_semaphore, #tpu.memory_space<semaphore_mem>> -> memref<1x!tpu.dma_semaphore, #tpu.memory_space<semaphore_mem>>
      %91 = tpu.memref_squeeze %90 : memref<1x!tpu.dma_semaphore, #tpu.memory_space<semaphore_mem>> -> memref<!tpu.dma_semaphore, #tpu.memory_space<semaphore_mem>>
      tpu.enqueue_dma source(%88 : memref<1x32xf32, #tpu.memory_space<any>>) target(%89 : memref<1x32xf32, #tpu.memory_space<vmem>>) target_semaphore(%91 : memref<!tpu.dma_semaphore, #tpu.memory_space<semaphore_mem>>)
      %c4_i32 = arith.constant 4 : i32
      %c0_i32_46 = arith.constant 0 : i32
      %92 = arith.addi %c0_i32_46, %c4_i32 : i32
      %93 = arith.index_cast %92 : i32 to index
      %94 = memref.load %arg1[%93] : memref<16xi32, #tpu.memory_space<smem>>
      %95 = arith.addi %59, %c4_i32 : i32
      %c0_i32_47 = arith.constant 0 : i32
      %c0_i32_48 = arith.constant 0 : i32
      %96 = tpu.memref_slice %arg7[%94, %c0_i32_48] : memref<50x32xf32, #tpu.memory_space<any>> -> memref<1x32xf32, #tpu.memory_space<any>>
      %c0_i32_49 = arith.constant 0 : i32
      %97 = tpu.memref_slice %arg9[%95, %c0_i32_49] : memref<16x32xf32, #tpu.memory_space<vmem>> -> memref<1x32xf32, #tpu.memory_space<vmem>>
      %98 = tpu.memref_slice %arg10[%c0_i32_47] : memref<2x!tpu.dma_semaphore, #tpu.memory_space<semaphore_mem>> -> memref<1x!tpu.dma_semaphore, #tpu.memory_space<semaphore_mem>>
      %99 = tpu.memref_squeeze %98 : memref<1x!tpu.dma_semaphore, #tpu.memory_space<semaphore_mem>> -> memref<!tpu.dma_semaphore, #tpu.memory_space<semaphore_mem>>
      tpu.enqueue_dma source(%96 : memref<1x32xf32, #tpu.memory_space<any>>) target(%97 : memref<1x32xf32, #tpu.memory_space<vmem>>) target_semaphore(%99 : memref<!tpu.dma_semaphore, #tpu.memory_space<semaphore_mem>>)
      %c5_i32 = arith.constant 5 : i32
      %c0_i32_50 = arith.constant 0 : i32
      %100 = arith.addi %c0_i32_50, %c5_i32 : i32
      %101 = arith.index_cast %100 : i32 to index
      %102 = memref.load %arg1[%101] : memref<16xi32, #tpu.memory_space<smem>>
      %103 = arith.addi %59, %c5_i32 : i32
      %c0_i32_51 = arith.constant 0 : i32
      %c0_i32_52 = arith.constant 0 : i32
      %104 = tpu.memref_slice %arg7[%102, %c0_i32_52] : memref<50x32xf32, #tpu.memory_space<any>> -> memref<1x32xf32, #tpu.memory_space<any>>
      %c0_i32_53 = arith.constant 0 : i32
      %105 = tpu.memref_slice %arg9[%103, %c0_i32_53] : memref<16x32xf32, #tpu.memory_space<vmem>> -> memref<1x32xf32, #tpu.memory_space<vmem>>
      %106 = tpu.memref_slice %arg10[%c0_i32_51] : memref<2x!tpu.dma_semaphore, #tpu.memory_space<semaphore_mem>> -> memref<1x!tpu.dma_semaphore, #tpu.memory_space<semaphore_mem>>
      %107 = tpu.memref_squeeze %106 : memref<1x!tpu.dma_semaphore, #tpu.memory_space<semaphore_mem>> -> memref<!tpu.dma_semaphore, #tpu.memory_space<semaphore_mem>>
      tpu.enqueue_dma source(%104 : memref<1x32xf32, #tpu.memory_space<any>>) target(%105 : memref<1x32xf32, #tpu.memory_space<vmem>>) target_semaphore(%107 : memref<!tpu.dma_semaphore, #tpu.memory_space<semaphore_mem>>)
      %c6_i32 = arith.constant 6 : i32
      %c0_i32_54 = arith.constant 0 : i32
      %108 = arith.addi %c0_i32_54, %c6_i32 : i32
      %109 = arith.index_cast %108 : i32 to index
      %110 = memref.load %arg1[%109] : memref<16xi32, #tpu.memory_space<smem>>
      %111 = arith.addi %59, %c6_i32 : i32
      %c0_i32_55 = arith.constant 0 : i32
      %c0_i32_56 = arith.constant 0 : i32
      %112 = tpu.memref_slice %arg7[%110, %c0_i32_56] : memref<50x32xf32, #tpu.memory_space<any>> -> memref<1x32xf32, #tpu.memory_space<any>>
      %c0_i32_57 = arith.constant 0 : i32
      %113 = tpu.memref_slice %arg9[%111, %c0_i32_57] : memref<16x32xf32, #tpu.memory_space<vmem>> -> memref<1x32xf32, #tpu.memory_space<vmem>>
      %114 = tpu.memref_slice %arg10[%c0_i32_55] : memref<2x!tpu.dma_semaphore, #tpu.memory_space<semaphore_mem>> -> memref<1x!tpu.dma_semaphore, #tpu.memory_space<semaphore_mem>>
      %115 = tpu.memref_squeeze %114 : memref<1x!tpu.dma_semaphore, #tpu.memory_space<semaphore_mem>> -> memref<!tpu.dma_semaphore, #tpu.memory_space<semaphore_mem>>
      tpu.enqueue_dma source(%112 : memref<1x32xf32, #tpu.memory_space<any>>) target(%113 : memref<1x32xf32, #tpu.memory_space<vmem>>) target_semaphore(%115 : memref<!tpu.dma_semaphore, #tpu.memory_space<semaphore_mem>>)
      %c7_i32 = arith.constant 7 : i32
      %c0_i32_58 = arith.constant 0 : i32
      %116 = arith.addi %c0_i32_58, %c7_i32 : i32
      %117 = arith.index_cast %116 : i32 to index
      %118 = memref.load %arg1[%117] : memref<16xi32, #tpu.memory_space<smem>>
      %119 = arith.addi %59, %c7_i32 : i32
      %c0_i32_59 = arith.constant 0 : i32
      %c0_i32_60 = arith.constant 0 : i32
      %120 = tpu.memref_slice %arg7[%118, %c0_i32_60] : memref<50x32xf32, #tpu.memory_space<any>> -> memref<1x32xf32, #tpu.memory_space<any>>
      %c0_i32_61 = arith.constant 0 : i32
      %121 = tpu.memref_slice %arg9[%119, %c0_i32_61] : memref<16x32xf32, #tpu.memory_space<vmem>> -> memref<1x32xf32, #tpu.memory_space<vmem>>
      %122 = tpu.memref_slice %arg10[%c0_i32_59] : memref<2x!tpu.dma_semaphore, #tpu.memory_space<semaphore_mem>> -> memref<1x!tpu.dma_semaphore, #tpu.memory_space<semaphore_mem>>
      %123 = tpu.memref_squeeze %122 : memref<1x!tpu.dma_semaphore, #tpu.memory_space<semaphore_mem>> -> memref<!tpu.dma_semaphore, #tpu.memory_space<semaphore_mem>>
      tpu.enqueue_dma source(%120 : memref<1x32xf32, #tpu.memory_space<any>>) target(%121 : memref<1x32xf32, #tpu.memory_space<vmem>>) target_semaphore(%123 : memref<!tpu.dma_semaphore, #tpu.memory_space<semaphore_mem>>)
      %c8_i32_62 = arith.constant 8 : i32
    } else {
    }
    %c0 = arith.constant 0 : index
    %c0_1 = arith.constant 0 : index
    %c0_2 = arith.constant 0 : index
    %3 = vector.load %arg2[%c0, %c0_1, %c0_2] : memref<1x8x1xi32, #tpu.memory_space<vmem>>, vector<1x8x1xi32>
    %4 = vector.shape_cast %3 : vector<1x8x1xi32> to vector<8x1xi32>
    %c0_i32_3 = arith.constant 0 : i32
    %5 = vector.broadcast %c0_i32_3 : i32 to vector<8x1xi32>
    %6 = arith.cmpi eq, %4, %5 : vector<8x1xi32>
    %c0_4 = arith.constant 0 : index
    %c0_5 = arith.constant 0 : index
    %7 = vector.load %arg4[%c0_4, %c0_5] : memref<2x32xf32, #tpu.memory_space<vmem>>, vector<1x32xf32>
    %c1 = arith.constant 1 : index
    %c0_6 = arith.constant 0 : index
    %8 = vector.load %arg4[%c1, %c0_6] : memref<2x32xf32, #tpu.memory_space<vmem>>, vector<1x32xf32>
    %9 = vector.shape_cast %6 : vector<8x1xi1> to vector<8x1xi1>
    %10 = vector.broadcast %9 : vector<8x1xi1> to vector<8x32xi1>
    %11 = vector.shape_cast %7 : vector<1x32xf32> to vector<1x32xf32>
    %12 = vector.broadcast %11 : vector<1x32xf32> to vector<8x32xf32>
    %13 = vector.shape_cast %8 : vector<1x32xf32> to vector<1x32xf32>
    %14 = vector.broadcast %13 : vector<1x32xf32> to vector<8x32xf32>
    %15 = arith.select %10, %12, %14 : vector<8x32xi1>, vector<8x32xf32>
    %c0_7 = arith.constant 0 : index
    %c0_8 = arith.constant 0 : index
    %16 = vector.load %arg3[%c0_7, %c0_8] : memref<8x32xf32, #tpu.memory_space<vmem>>, vector<8x32xf32>
    %17 = arith.addf %16, %15 : vector<8x32xf32>
    %c2_i32 = arith.constant 2 : i32
    %18 = arith.remsi %arg0, %c2_i32 : i32
    %c8_i32 = arith.constant 8 : i32
    %19 = arith.muli %18, %c8_i32 : i32
    %20 = tpu.assume_multiple %19, 8 : i32
    %c0_i32_9 = arith.constant 0 : i32
    %c0_i32_10 = arith.constant 0 : i32
    %21 = tpu.memref_slice %arg7[%c0_i32_9, %c0_i32_10] : memref<50x32xf32, #tpu.memory_space<any>> -> memref<8x32xf32, #tpu.memory_space<any>>
    %c0_i32_11 = arith.constant 0 : i32
    %22 = tpu.memref_slice %arg9[%20, %c0_i32_11] : memref<16x32xf32, #tpu.memory_space<vmem>> -> memref<8x32xf32, #tpu.memory_space<vmem>>
    %23 = tpu.memref_slice %arg10[%18] : memref<2x!tpu.dma_semaphore, #tpu.memory_space<semaphore_mem>> -> memref<1x!tpu.dma_semaphore, #tpu.memory_space<semaphore_mem>>
    %24 = tpu.memref_squeeze %23 : memref<1x!tpu.dma_semaphore, #tpu.memory_space<semaphore_mem>> -> memref<!tpu.dma_semaphore, #tpu.memory_space<semaphore_mem>>
    tpu.wait_dma2 semaphore(%24 : memref<!tpu.dma_semaphore, #tpu.memory_space<semaphore_mem>>) src(%21 : memref<8x32xf32, #tpu.memory_space<any>>) dst(%22 : memref<8x32xf32, #tpu.memory_space<vmem>>)
    %c1_i32 = arith.constant 1 : i32
    %25 = arith.addi %arg0, %c1_i32 : i32
    %c2_i32_12 = arith.constant 2 : i32
    %26 = arith.cmpi slt, %25, %c2_i32_12 : i32
    %27 = arith.extui %26 : i1 to i32
    %c0_i32_13 = arith.constant 0 : i32
    %28 = arith.cmpi ne, %27, %c0_i32_13 : i32
    scf.if %28 {
      %c1_i32_26 = arith.constant 1 : i32
      %59 = arith.addi %arg0, %c1_i32_26 : i32
      %c1_i32_27 = arith.constant 1 : i32
      %60 = arith.addi %arg0, %c1_i32_27 : i32
      %c2_i32_28 = arith.constant 2 : i32
      %61 = arith.remsi %60, %c2_i32_28 : i32
      %c8_i32_29 = arith.constant 8 : i32
      %62 = arith.muli %61, %c8_i32_29 : i32
      %63 = tpu.assume_multiple %62, 8 : i32
      %c0_i32_30 = arith.constant 0 : i32
      %c8_i32_31 = arith.constant 8 : i32
      %64 = arith.muli %59, %c8_i32_31 : i32
      %65 = arith.addi %64, %c0_i32_30 : i32
      %66 = arith.index_cast %65 : i32 to index
      %67 = memref.load %arg1[%66] : memref<16xi32, #tpu.memory_space<smem>>
      %68 = arith.addi %63, %c0_i32_30 : i32
      %c0_i32_32 = arith.constant 0 : i32
      %69 = tpu.memref_slice %arg7[%67, %c0_i32_32] : memref<50x32xf32, #tpu.memory_space<any>> -> memref<1x32xf32, #tpu.memory_space<any>>
      %c0_i32_33 = arith.constant 0 : i32
      %70 = tpu.memref_slice %arg9[%68, %c0_i32_33] : memref<16x32xf32, #tpu.memory_space<vmem>> -> memref<1x32xf32, #tpu.memory_space<vmem>>
      %71 = tpu.memref_slice %arg10[%61] : memref<2x!tpu.dma_semaphore, #tpu.memory_space<semaphore_mem>> -> memref<1x!tpu.dma_semaphore, #tpu.memory_space<semaphore_mem>>
      %72 = tpu.memref_squeeze %71 : memref<1x!tpu.dma_semaphore, #tpu.memory_space<semaphore_mem>> -> memref<!tpu.dma_semaphore, #tpu.memory_space<semaphore_mem>>
      tpu.enqueue_dma source(%69 : memref<1x32xf32, #tpu.memory_space<any>>) target(%70 : memref<1x32xf32, #tpu.memory_space<vmem>>) target_semaphore(%72 : memref<!tpu.dma_semaphore, #tpu.memory_space<semaphore_mem>>)
      %c1_i32_34 = arith.constant 1 : i32
      %c8_i32_35 = arith.constant 8 : i32
      %73 = arith.muli %59, %c8_i32_35 : i32
      %74 = arith.addi %73, %c1_i32_34 : i32
      %75 = arith.index_cast %74 : i32 to index
      %76 = memref.load %arg1[%75] : memref<16xi32, #tpu.memory_space<smem>>
      %77 = arith.addi %63, %c1_i32_34 : i32
      %c0_i32_36 = arith.constant 0 : i32
      %78 = tpu.memref_slice %arg7[%76, %c0_i32_36] : memref<50x32xf32, #tpu.memory_space<any>> -> memref<1x32xf32, #tpu.memory_space<any>>
      %c0_i32_37 = arith.constant 0 : i32
      %79 = tpu.memref_slice %arg9[%77, %c0_i32_37] : memref<16x32xf32, #tpu.memory_space<vmem>> -> memref<1x32xf32, #tpu.memory_space<vmem>>
      %80 = tpu.memref_slice %arg10[%61] : memref<2x!tpu.dma_semaphore, #tpu.memory_space<semaphore_mem>> -> memref<1x!tpu.dma_semaphore, #tpu.memory_space<semaphore_mem>>
      %81 = tpu.memref_squeeze %80 : memref<1x!tpu.dma_semaphore, #tpu.memory_space<semaphore_mem>> -> memref<!tpu.dma_semaphore, #tpu.memory_space<semaphore_mem>>
      tpu.enqueue_dma source(%78 : memref<1x32xf32, #tpu.memory_space<any>>) target(%79 : memref<1x32xf32, #tpu.memory_space<vmem>>) target_semaphore(%81 : memref<!tpu.dma_semaphore, #tpu.memory_space<semaphore_mem>>)
      %c2_i32_38 = arith.constant 2 : i32
      %c8_i32_39 = arith.constant 8 : i32
      %82 = arith.muli %59, %c8_i32_39 : i32
      %83 = arith.addi %82, %c2_i32_38 : i32
      %84 = arith.index_cast %83 : i32 to index
      %85 = memref.load %arg1[%84] : memref<16xi32, #tpu.memory_space<smem>>
      %86 = arith.addi %63, %c2_i32_38 : i32
      %c0_i32_40 = arith.constant 0 : i32
      %87 = tpu.memref_slice %arg7[%85, %c0_i32_40] : memref<50x32xf32, #tpu.memory_space<any>> -> memref<1x32xf32, #tpu.memory_space<any>>
      %c0_i32_41 = arith.constant 0 : i32
      %88 = tpu.memref_slice %arg9[%86, %c0_i32_41] : memref<16x32xf32, #tpu.memory_space<vmem>> -> memref<1x32xf32, #tpu.memory_space<vmem>>
      %89 = tpu.memref_slice %arg10[%61] : memref<2x!tpu.dma_semaphore, #tpu.memory_space<semaphore_mem>> -> memref<1x!tpu.dma_semaphore, #tpu.memory_space<semaphore_mem>>
      %90 = tpu.memref_squeeze %89 : memref<1x!tpu.dma_semaphore, #tpu.memory_space<semaphore_mem>> -> memref<!tpu.dma_semaphore, #tpu.memory_space<semaphore_mem>>
      tpu.enqueue_dma source(%87 : memref<1x32xf32, #tpu.memory_space<any>>) target(%88 : memref<1x32xf32, #tpu.memory_space<vmem>>) target_semaphore(%90 : memref<!tpu.dma_semaphore, #tpu.memory_space<semaphore_mem>>)
      %c3_i32 = arith.constant 3 : i32
      %c8_i32_42 = arith.constant 8 : i32
      %91 = arith.muli %59, %c8_i32_42 : i32
      %92 = arith.addi %91, %c3_i32 : i32
      %93 = arith.index_cast %92 : i32 to index
      %94 = memref.load %arg1[%93] : memref<16xi32, #tpu.memory_space<smem>>
      %95 = arith.addi %63, %c3_i32 : i32
      %c0_i32_43 = arith.constant 0 : i32
      %96 = tpu.memref_slice %arg7[%94, %c0_i32_43] : memref<50x32xf32, #tpu.memory_space<any>> -> memref<1x32xf32, #tpu.memory_space<any>>
      %c0_i32_44 = arith.constant 0 : i32
      %97 = tpu.memref_slice %arg9[%95, %c0_i32_44] : memref<16x32xf32, #tpu.memory_space<vmem>> -> memref<1x32xf32, #tpu.memory_space<vmem>>
      %98 = tpu.memref_slice %arg10[%61] : memref<2x!tpu.dma_semaphore, #tpu.memory_space<semaphore_mem>> -> memref<1x!tpu.dma_semaphore, #tpu.memory_space<semaphore_mem>>
      %99 = tpu.memref_squeeze %98 : memref<1x!tpu.dma_semaphore, #tpu.memory_space<semaphore_mem>> -> memref<!tpu.dma_semaphore, #tpu.memory_space<semaphore_mem>>
      tpu.enqueue_dma source(%96 : memref<1x32xf32, #tpu.memory_space<any>>) target(%97 : memref<1x32xf32, #tpu.memory_space<vmem>>) target_semaphore(%99 : memref<!tpu.dma_semaphore, #tpu.memory_space<semaphore_mem>>)
      %c4_i32 = arith.constant 4 : i32
      %c8_i32_45 = arith.constant 8 : i32
      %100 = arith.muli %59, %c8_i32_45 : i32
      %101 = arith.addi %100, %c4_i32 : i32
      %102 = arith.index_cast %101 : i32 to index
      %103 = memref.load %arg1[%102] : memref<16xi32, #tpu.memory_space<smem>>
      %104 = arith.addi %63, %c4_i32 : i32
      %c0_i32_46 = arith.constant 0 : i32
      %105 = tpu.memref_slice %arg7[%103, %c0_i32_46] : memref<50x32xf32, #tpu.memory_space<any>> -> memref<1x32xf32, #tpu.memory_space<any>>
      %c0_i32_47 = arith.constant 0 : i32
      %106 = tpu.memref_slice %arg9[%104, %c0_i32_47] : memref<16x32xf32, #tpu.memory_space<vmem>> -> memref<1x32xf32, #tpu.memory_space<vmem>>
      %107 = tpu.memref_slice %arg10[%61] : memref<2x!tpu.dma_semaphore, #tpu.memory_space<semaphore_mem>> -> memref<1x!tpu.dma_semaphore, #tpu.memory_space<semaphore_mem>>
      %108 = tpu.memref_squeeze %107 : memref<1x!tpu.dma_semaphore, #tpu.memory_space<semaphore_mem>> -> memref<!tpu.dma_semaphore, #tpu.memory_space<semaphore_mem>>
      tpu.enqueue_dma source(%105 : memref<1x32xf32, #tpu.memory_space<any>>) target(%106 : memref<1x32xf32, #tpu.memory_space<vmem>>) target_semaphore(%108 : memref<!tpu.dma_semaphore, #tpu.memory_space<semaphore_mem>>)
      %c5_i32 = arith.constant 5 : i32
      %c8_i32_48 = arith.constant 8 : i32
      %109 = arith.muli %59, %c8_i32_48 : i32
      %110 = arith.addi %109, %c5_i32 : i32
      %111 = arith.index_cast %110 : i32 to index
      %112 = memref.load %arg1[%111] : memref<16xi32, #tpu.memory_space<smem>>
      %113 = arith.addi %63, %c5_i32 : i32
      %c0_i32_49 = arith.constant 0 : i32
      %114 = tpu.memref_slice %arg7[%112, %c0_i32_49] : memref<50x32xf32, #tpu.memory_space<any>> -> memref<1x32xf32, #tpu.memory_space<any>>
      %c0_i32_50 = arith.constant 0 : i32
      %115 = tpu.memref_slice %arg9[%113, %c0_i32_50] : memref<16x32xf32, #tpu.memory_space<vmem>> -> memref<1x32xf32, #tpu.memory_space<vmem>>
      %116 = tpu.memref_slice %arg10[%61] : memref<2x!tpu.dma_semaphore, #tpu.memory_space<semaphore_mem>> -> memref<1x!tpu.dma_semaphore, #tpu.memory_space<semaphore_mem>>
      %117 = tpu.memref_squeeze %116 : memref<1x!tpu.dma_semaphore, #tpu.memory_space<semaphore_mem>> -> memref<!tpu.dma_semaphore, #tpu.memory_space<semaphore_mem>>
      tpu.enqueue_dma source(%114 : memref<1x32xf32, #tpu.memory_space<any>>) target(%115 : memref<1x32xf32, #tpu.memory_space<vmem>>) target_semaphore(%117 : memref<!tpu.dma_semaphore, #tpu.memory_space<semaphore_mem>>)
      %c6_i32 = arith.constant 6 : i32
      %c8_i32_51 = arith.constant 8 : i32
      %118 = arith.muli %59, %c8_i32_51 : i32
      %119 = arith.addi %118, %c6_i32 : i32
      %120 = arith.index_cast %119 : i32 to index
      %121 = memref.load %arg1[%120] : memref<16xi32, #tpu.memory_space<smem>>
      %122 = arith.addi %63, %c6_i32 : i32
      %c0_i32_52 = arith.constant 0 : i32
      %123 = tpu.memref_slice %arg7[%121, %c0_i32_52] : memref<50x32xf32, #tpu.memory_space<any>> -> memref<1x32xf32, #tpu.memory_space<any>>
      %c0_i32_53 = arith.constant 0 : i32
      %124 = tpu.memref_slice %arg9[%122, %c0_i32_53] : memref<16x32xf32, #tpu.memory_space<vmem>> -> memref<1x32xf32, #tpu.memory_space<vmem>>
      %125 = tpu.memref_slice %arg10[%61] : memref<2x!tpu.dma_semaphore, #tpu.memory_space<semaphore_mem>> -> memref<1x!tpu.dma_semaphore, #tpu.memory_space<semaphore_mem>>
      %126 = tpu.memref_squeeze %125 : memref<1x!tpu.dma_semaphore, #tpu.memory_space<semaphore_mem>> -> memref<!tpu.dma_semaphore, #tpu.memory_space<semaphore_mem>>
      tpu.enqueue_dma source(%123 : memref<1x32xf32, #tpu.memory_space<any>>) target(%124 : memref<1x32xf32, #tpu.memory_space<vmem>>) target_semaphore(%126 : memref<!tpu.dma_semaphore, #tpu.memory_space<semaphore_mem>>)
      %c7_i32 = arith.constant 7 : i32
      %c8_i32_54 = arith.constant 8 : i32
      %127 = arith.muli %59, %c8_i32_54 : i32
      %128 = arith.addi %127, %c7_i32 : i32
      %129 = arith.index_cast %128 : i32 to index
      %130 = memref.load %arg1[%129] : memref<16xi32, #tpu.memory_space<smem>>
      %131 = arith.addi %63, %c7_i32 : i32
      %c0_i32_55 = arith.constant 0 : i32
      %132 = tpu.memref_slice %arg7[%130, %c0_i32_55] : memref<50x32xf32, #tpu.memory_space<any>> -> memref<1x32xf32, #tpu.memory_space<any>>
      %c0_i32_56 = arith.constant 0 : i32
      %133 = tpu.memref_slice %arg9[%131, %c0_i32_56] : memref<16x32xf32, #tpu.memory_space<vmem>> -> memref<1x32xf32, #tpu.memory_space<vmem>>
      %134 = tpu.memref_slice %arg10[%61] : memref<2x!tpu.dma_semaphore, #tpu.memory_space<semaphore_mem>> -> memref<1x!tpu.dma_semaphore, #tpu.memory_space<semaphore_mem>>
      %135 = tpu.memref_squeeze %134 : memref<1x!tpu.dma_semaphore, #tpu.memory_space<semaphore_mem>> -> memref<!tpu.dma_semaphore, #tpu.memory_space<semaphore_mem>>
      tpu.enqueue_dma source(%132 : memref<1x32xf32, #tpu.memory_space<any>>) target(%133 : memref<1x32xf32, #tpu.memory_space<vmem>>) target_semaphore(%135 : memref<!tpu.dma_semaphore, #tpu.memory_space<semaphore_mem>>)
      %c8_i32_57 = arith.constant 8 : i32
    } else {
    }
    %29 = arith.index_cast %20 : i32 to index
    %c0_14 = arith.constant 0 : index
    %30 = vector.load %arg9[%29, %c0_14] : memref<16x32xf32, #tpu.memory_space<vmem>>, vector<8x32xf32>
    %31 = arith.addf %30, %17 : vector<8x32xf32>
    %cst = arith.constant dense<0.000000e+00> : vector<8xf32>
    %32 = vector.multi_reduction <add>, %31, %cst [1] : vector<8x32xf32> to vector<8xf32>
    %33 = vector.shape_cast %32 : vector<8xf32> to vector<8x1xf32>
    %cst_15 = arith.constant 3.200000e+01 : f32
    %34 = vector.broadcast %cst_15 : f32 to vector<8x1xf32>
    %35 = arith.divf %33, %34 : vector<8x1xf32>
    %36 = arith.mulf %31, %31 : vector<8x32xf32>
    %cst_16 = arith.constant dense<0.000000e+00> : vector<8xf32>
    %37 = vector.multi_reduction <add>, %36, %cst_16 [1] : vector<8x32xf32> to vector<8xf32>
    %38 = vector.shape_cast %37 : vector<8xf32> to vector<8x1xf32>
    %cst_17 = arith.constant 3.200000e+01 : f32
    %39 = vector.broadcast %cst_17 : f32 to vector<8x1xf32>
    %40 = arith.divf %38, %39 : vector<8x1xf32>
    %41 = arith.mulf %35, %35 : vector<8x1xf32>
    %42 = arith.subf %40, %41 : vector<8x1xf32>
    %cst_18 = arith.constant 9.99999974E-6 : f32
    %43 = vector.broadcast %cst_18 : f32 to vector<8x1xf32>
    %44 = arith.addf %42, %43 : vector<8x1xf32>
    %45 = math.rsqrt %44 : vector<8x1xf32>
    %46 = vector.broadcast %35 : vector<8x1xf32> to vector<8x32xf32>
    %47 = arith.subf %31, %46 : vector<8x32xf32>
    %48 = vector.broadcast %45 : vector<8x1xf32> to vector<8x32xf32>
    %49 = arith.mulf %47, %48 : vector<8x32xf32>
    %c0_19 = arith.constant 0 : index
    %c0_20 = arith.constant 0 : index
    %50 = vector.load %arg5[%c0_19, %c0_20] : memref<1x32xf32, #tpu.memory_space<vmem>>, vector<1x32xf32>
    %51 = vector.broadcast %50 : vector<1x32xf32> to vector<8x32xf32>
    %52 = arith.mulf %49, %51 : vector<8x32xf32>
    %c0_21 = arith.constant 0 : index
    %c0_22 = arith.constant 0 : index
    %53 = vector.load %arg6[%c0_21, %c0_22] : memref<1x32xf32, #tpu.memory_space<vmem>>, vector<1x32xf32>
    %54 = vector.broadcast %53 : vector<1x32xf32> to vector<8x32xf32>
    %55 = arith.addf %52, %54 : vector<8x32xf32>
    %c0_23 = arith.constant 0 : index
    %c0_24 = arith.constant 0 : index
    %c0_25 = arith.constant 0 : index
    %56 = vector.load %arg8[%c0_23, %c0_24, %c0_25] : memref<1x8x32xf32, #tpu.memory_space<vmem>>, vector<1x8x32xf32>
    %57 = vector.shape_cast %56 : vector<1x8x32xf32> to vector<8x32xf32>
    %58 = vector.shape_cast %55 : vector<8x32xf32> to vector<1x8x32xf32>
    tpu.vector_store %arg8[%c0_23, %c0_24, %c0_25], %58 {strides = array<i32>} : memref<1x8x32xf32, #tpu.memory_space<vmem>>, vector<1x8x32xf32>,
    return
  }
  func.func @transform_0(%arg0: i32, %arg1: memref<16xi32, #tpu.memory_space<smem>>) -> (i32, i32, i32) {
    %c0_i32 = arith.constant 0 : i32
    %c0_i32_0 = arith.constant 0 : i32
    %c0_i32_1 = arith.constant 0 : i32
    return %arg0, %c0_i32, %c0_i32_0 : i32, i32, i32
  }
  func.func @transform_1(%arg0: i32, %arg1: memref<16xi32, #tpu.memory_space<smem>>) -> (i32, i32) {
    %c0_i32 = arith.constant 0 : i32
    %c0_i32_0 = arith.constant 0 : i32
    %c0_i32_1 = arith.constant 0 : i32
    return %c0_i32, %c0_i32_0 : i32, i32
  }
  func.func @transform_2(%arg0: i32, %arg1: memref<16xi32, #tpu.memory_space<smem>>) -> (i32, i32) {
    %c0_i32 = arith.constant 0 : i32
    %c0_i32_0 = arith.constant 0 : i32
    %c0_i32_1 = arith.constant 0 : i32
    return %c0_i32, %c0_i32_0 : i32, i32
  }
  func.func @transform_3(%arg0: i32, %arg1: memref<16xi32, #tpu.memory_space<smem>>) -> (i32, i32) {
    %c0_i32 = arith.constant 0 : i32
    %c0_i32_0 = arith.constant 0 : i32
    %c0_i32_1 = arith.constant 0 : i32
    return %c0_i32, %c0_i32_0 : i32, i32
  }
  func.func @transform_4(%arg0: i32, %arg1: memref<16xi32, #tpu.memory_space<smem>>) -> (i32, i32) {
    %c0_i32 = arith.constant 0 : i32
    %c0_i32_0 = arith.constant 0 : i32
    %c0_i32_1 = arith.constant 0 : i32
    return %c0_i32, %c0_i32_0 : i32, i32
  }
  func.func @transform_6(%arg0: i32, %arg1: memref<16xi32, #tpu.memory_space<smem>>) -> (i32, i32, i32) {
    %c0_i32 = arith.constant 0 : i32
    %c0_i32_0 = arith.constant 0 : i32
    %c0_i32_1 = arith.constant 0 : i32
    return %arg0, %c0_i32, %c0_i32_0 : i32, i32, i32
  }
}

</mosaic_0001>

<bundles_post_ra>
// kernel: tpu_custom_call.1
= control target key start
LH: loop header
LB: loop body
LE: loop exit
PB: predicated region body
PF: predicated region fallthrough
CT: control target
= control target key end

     0   :  { %s1306_s27 = smov [#allocation5]   ;;  %s1562_s0 = inlined_call_operand.vmem [shape: s32[16], index: 0, kind: input, shape index: {}]   ;;  %s1563_s1 = inlined_call_operand.vmem [shape: s32[2,8,1], index: 1, kind: input, shape index: {}]   ;;  %s1564_s2 = inlined_call_operand.vmem [shape: f32[8,32], index: 2, kind: input, shape index: {}]   ;;  %s1565_s3 = inlined_call_operand.vmem [shape: f32[2,32], index: 3, kind: input, shape index: {}]   ;;  %s1566_s4 = inlined_call_operand.vmem [shape: f32[1,32], index: 4, kind: input, shape index: {}]   ;;  %s1567_s5 = inlined_call_operand.vmem [shape: f32[1,32], index: 5, kind: input, shape index: {}]   ;;  %s1568_s6 = inlined_call_operand.vmem [shape: f32[50,32], index: 6, kind: input, shape index: {}]   ;;  %s1569_s7 = inlined_call_operand.hbm [shape: f32[2,8,32], index: 7, kind: output, shape index: {}]  }
   0x1   :  { %1571 = sst [smem:[#allocation27_spill]] %s1563_s1  ;;  %s13_s26 = sshll.u32 %s1562_s0, 4  ;;  %s14_s26 = int_to_ptr.vmem [resolvable:$true] %s13_s26 }
   0x2   :  { %16 = dma.vmem_to_smem %s14_s26, 16, %s1306_s27, [#allocation4] }
   0x3   :  { %1282 = dma.done.wait [#allocation4], 16 }
   0x4   :  { %1283 = vsyncadd [#allocation4], 4294967280 }
   0x5   :  { %19 = sfence }
   0x6   :  { %20 = vsyncpa [#allocation7], 0 }
   0x7   :  { %22 = vsyncpa [#allocation7 + $0x1], 0  ;;  %s1352_s28 = smov 0   ;;  %s1354_s29 = smov 0  }
   0x8   :  { %s1356_s30 = smov 0   ;;  %s1358_s8 = smov 0  }
   0x9 LB: > { %s1373_s0 = sadd.s32 4294967295, %s1304_s8   ;;  %s1133_s9 = sadd.s32 4294967294, %s1304_s8   ;;  %s1304_s8 = sphi %s1358_s8, %s1582_s8   ;;  %s1300_s30 = sphi %s1356_s30, %s1581_s30   ;;  %s1296_s29 = sphi %s1354_s29, %s1580_s29   ;;  %s1292_s28 = sphi %s1352_s28, %s1579_s28  }
   0xa   : > { %s1377_s10 = sadd.s32 1, %s1304_s8   ;;  %s145_s11 = sadd.s32 1, %s1300_s30 }
   0xb   : > { %s142_s12 = ssub.s32 %s1304_s8, %s1377_s10  ;;  %p155_p0 = scmp.ne.s32.totalorder %s1300_s30, %s1296_s29 }
   0xc   : > { %p143_p1 = scmp.eq.s32.totalorder %s142_s12, 0  ;;  %p156_p2 = scmp.eq.s32.totalorder %s1373_s0, 1 }
   0xd   : > { %p161_p3 = scmp.ne.s32.totalorder %s1296_s29, %s1292_s28  ;;  %p162_p4 = scmp.eq.s32.totalorder %s1133_s9, 1 }
   0xe   : > { %s1388_s13 = scalar_select %p143_p1, %s1300_s30, %s145_s11  }
   0xf   : > { %p1390_p5 = por %p156_p2, %p155_p0  ;;  %p1394_p6 = por %p162_p4, %p161_p3 }
  0x10   : > { %p1136_p7 = scmp.ge.s32.totalorder %s1304_s8, 1  ;;  %p199_p8 = scmp.lt.s32.totalorder %s1304_s8, 3 }
  0x12   : > { %p200_p9 = pnand %p1136_p7, %p199_p8 }
  0x13   : > { %s1570_s16 = sand.u32 (!%p200_p9), 1, %s1296_s29   ;;  %p226_p10 = scmp.lt.s32.totalorder (!%p200_p9), %s1373_s0, 1 }
  0x14   : > { %203 = sbr.rel (%p200_p9) target bundleno = 473 (0x1d9), region = 40  ;;  %s1404_s17 = sshll.u32 (!%p200_p9), %s1570_s16, 3 }
  0x15   : > { %s1574_s1 = sld [smem:[#allocation27_spill]] (!%p200_p9)  ;;  %p1139_p11 = scmp.ne.s32.totalorder (!%p200_p9), %s1373_s0, 0 }
  0x19   : > { %s227_s18 = scalar_select %p226_p10, %s1373_s0, 1 }
  0x1a   : > { %233 = sbr.rel (%p1139_p11) target bundleno = 99 (0x63), region = 44  ;;  %s234_s24 = sld [smem:[#allocation5]] (!%p1139_p11) }
  0x1b   : > { %s1138_s19 = sshll.u32 %s227_s18, 3 }
  0x1c   : > { %s1410_s22 = scalar_lea.vmem %s1574_s1, %s1138_s19 }
  0x20   : > { %s235_s27 = scalar_lea.vmem %s1568_s6, %s234_s24 }
  0x21   : > { %v250_v0 = vld [vmem:[%s235_s27] sm:$0x1] }
  0x22   : > { %251 = vst [vmem:[#allocation2] sm:$0x1] %v250_v0 }
  0x23   : > { %269 = vsyncadd [#allocation3], 16  ;;  %s1140_s9 = sld [smem:[#allocation5 + $0x1]] }
  0x29   : > { %s272_s18 = scalar_lea.vmem %s1568_s6, %s1140_s9 }
  0x2a   : > { %v288_v1 = vld [vmem:[%s272_s18] sm:$0x1] }
  0x2b   : > { %289 = vst [vmem:[#allocation2 + $0x1] sm:$0x1] %v288_v1 }
  0x2c   : > { %307 = vsyncadd [#allocation3], 16  ;;  %s1141_s19 = sld [smem:[#allocation5 + $0x2]] }
  0x32   : > { %s310_s16 = scalar_lea.vmem %s1568_s6, %s1141_s19 }
  0x33   : > { %v326_v2 = vld [vmem:[%s310_s16] sm:$0x1] }
  0x34   : > { %327 = vst [vmem:[#allocation2 + $0x2] sm:$0x1] %v326_v2 }
  0x35   : > { %345 = vsyncadd [#allocation3], 16  ;;  %s1142_s24 = sld [smem:[#allocation5 + $0x3]] }
  0x3b   : > { %s348_s27 = scalar_lea.vmem %s1568_s6, %s1142_s24 }
  0x3c   : > { %v364_v3 = vld [vmem:[%s348_s27] sm:$0x1] }
  0x3d   : > { %365 = vst [vmem:[#allocation2 + $0x3] sm:$0x1] %v364_v3 }
  0x3e   : > { %383 = vsyncadd [#allocation3], 16  ;;  %s1143_s9 = sld [smem:[#allocation5 + $0x4]] }
  0x44   : > { %s386_s18 = scalar_lea.vmem %s1568_s6, %s1143_s9 }
  0x45   : > { %v402_v4 = vld [vmem:[%s386_s18] sm:$0x1] }
  0x46   : > { %403 = vst [vmem:[#allocation2 + $0x4] sm:$0x1] %v402_v4 }
  0x47   : > { %421 = vsyncadd [#allocation3], 16  ;;  %s1144_s19 = sld [smem:[#allocation5 + $0x5]] }
  0x4d   : > { %s424_s21 = scalar_lea.vmem %s1568_s6, %s1144_s19 }
  0x4e   : > { %v440_v5 = vld [vmem:[%s424_s21] sm:$0x1] }
  0x4f   : > { %441 = vst [vmem:[#allocation2 + $0x5] sm:$0x1] %v440_v5 }
  0x50   : > { %459 = vsyncadd [#allocation3], 16  ;;  %s1145_s24 = sld [smem:[#allocation5 + $0x6]] }
  0x56   : > { %s462_s27 = scalar_lea.vmem %s1568_s6, %s1145_s24 }
  0x57   : > { %v478_v6 = vld [vmem:[%s462_s27] sm:$0x1] }
  0x58   : > { %479 = vst [vmem:[#allocation2 + $0x6] sm:$0x1] %v478_v6 }
  0x59   : > { %497 = vsyncadd [#allocation3], 16  ;;  %s1146_s9 = sld [smem:[#allocation5 + $0x7]] }
  0x5f   : > { %s500_s18 = scalar_lea.vmem %s1568_s6, %s1146_s9 }
  0x60   : > { %v516_v7 = vld [vmem:[%s500_s18] sm:$0x1] }
  0x61   : > { %517 = vst [vmem:[#allocation2 + $0x7] sm:$0x1] %v516_v7 }
  0x62   : > { %535 = vsyncadd [#allocation3], 16 }
  0x63 PF: > { %v536_v8 = vld [vmem:[%s1410_s22] sm:$0xff]  ;;  %v1307_v9 = vmov 0   ;;  %p550_p12 = scmp.lt.s32.totalorder %s1373_s0, 0  ;;  %s551_s19 = ssub.s32 0, %s1373_s0 }
  0x64   : > { %1217 = vset.pattern.permute.xlu0 %v1307_v9  ;;  %vm537_vm0 = vcmp.eq.s32.totalorder %v536_v8, 0  ;;  %s1147_s16 = smin.u32 %s1373_s0, %s551_s19  ;;  %v1218_v11 = vld [vmem:[%s1565_s3] ss:$0 sm:$0xff]  ;;  %v1219_v12 = vld [vmem:[%s1565_s3 + $0x1] ss:$0 sm:$0xff] }
  0x65   : > { %v540_v10 = vsel %vm537_vm0, 1, %v1307_v9  ;;  %s553_s20 = sand.u32 1, %s1147_s16   ;;  %v548_v13 = vld [vmem:[%s1564_s2] sm:$0xff] }
  0x66   : > { %542 = vperm.xlu0 %1217, %v540_v10   ;;  %s554_s21 = ssub.s32 0, %s553_s20 }
  0x67   : > { %s1584_s21 = smov (!%p550_p12, %s554_s21), %s553_s20 }
  0x68   : > { %s557_s12 = scalar_lea.sflag [#allocation3], %s1584_s21 }
  0xd8   : > { %v543_v14 = vpop.permute.xlu0 %542 }
  0xd9   : > { %vm544_vm1 = vcmp.eq.s32.totalorder %v543_v14, 1 }
  0xda   : > { %v547_v15 = vsel %vm544_vm1, %v1218_v11, %v1219_v12 }
  0xdb   : > { %v1454_v16 = vadd.f32 %v548_v13, %v547_v15 }
  0xdc   : > { %1284 = dma.done.wait %s557_s12, 128 }
  0xdd   : > { %1285 = vsyncadd %s557_s12, 4294967168  ;;  %s561_s18 = sadd.s32 1, %s1373_s0 }
  0xde   : > { %p1149_p13 = scmp.ge.s32.totalorder %s561_s18, 2 }
  0xdf   : > { %p566_p0 = scmp.lt.s32.totalorder (!%p1149_p13), %s561_s18, 0  ;;  %s567_s19 = ssub.s32 (!%p1149_p13), 0, %s561_s18 }
  0xe0   : > { %565 = sbr.rel (%p1149_p13) target bundleno = 307 (0x133), region = 288  ;;  %s1150_s16 = smin.u32 (!%p1149_p13), %s567_s19, %s561_s18 }
  0xe1   : > { %s1173_s20 = sshll.u32 (!%p1149_p13), %s1373_s0, 3  ;;  %s569_s25 = sand.u32 (!%p1149_p13), 1, %s1150_s16  }
  0xe2   : > { %s1459_s26 = sadd.s32 (!%p1149_p13), 8, %s1173_s20  ;;  %s570_s22 = ssub.s32 (!%p1149_p13), 0, %s569_s25 }
  0xe3   : > { %s574_s27 = sld [smem:[#allocation5 + %s1459_s26]] (!%p1149_p13) }
  0xe5   : > { %s1586_s22 = smov (!%p566_p0, %s570_s22), %s569_s25 }
  0xe6   : > { %s1151_s9 = sshll.u32 %s1586_s22, 3  ;;  %s1468_s1 = scalar_lea.sflag [#allocation3], %s1586_s22 }
  0xe7   : > { %s1465_s24 = scalar_lea.vmem [#allocation2], %s1151_s9 }
  0xe9   : > { %s575_s12 = scalar_lea.vmem %s1568_s6, %s574_s27 }
  0xea   : > { %v592_v17 = vld [vmem:[%s575_s12] sm:$0x1] }
  0xeb   : > { %593 = vst [vmem:[%s1465_s24] sm:$0x1] %v592_v17 }
  0xec   : > { %611 = vsyncadd %s1468_s1, 16  ;;  %s612_s18 = sadd.s32 1, %s1459_s26 }
  0xed   : > { %s613_s19 = sld [smem:[#allocation5 + %s612_s18]] }
  0xf3   : > { %s615_s25 = scalar_lea.vmem %s1568_s6, %s613_s19 }
  0xf4   : > { %v631_v18 = vld [vmem:[%s615_s25] sm:$0x1] }
  0xf5   : > { %1154 = vst [vmem:[%s1465_s24 + $0x1] sm:$0x1] %v631_v18 }
  0xf6   : > { %650 = vsyncadd %s1468_s1, 16  ;;  %s651_s23 = sadd.s32 2, %s1459_s26 }
  0xf7   : > { %s652_s22 = sld [smem:[#allocation5 + %s651_s23]] }
  0xfd   : > { %s654_s11 = scalar_lea.vmem %s1568_s6, %s652_s22 }
  0xfe   : > { %v670_v19 = vld [vmem:[%s654_s11] sm:$0x1] }
  0xff   : > { %1156 = vst [vmem:[%s1465_s24 + $0x2] sm:$0x1] %v670_v19 }
 0x100   : > { %689 = vsyncadd %s1468_s1, 16  ;;  %s690_s12 = sadd.s32 3, %s1459_s26 }
 0x101   : > { %s691_s18 = sld [smem:[#allocation5 + %s690_s12]] }
 0x107   : > { %s693_s20 = scalar_lea.vmem %s1568_s6, %s691_s18 }
 0x108   : > { %v709_v20 = vld [vmem:[%s693_s20] sm:$0x1] }
 0x109   : > { %1158 = vst [vmem:[%s1465_s24 + $0x3] sm:$0x1] %v709_v20 }
 0x10a   : > { %728 = vsyncadd %s1468_s1, 16  ;;  %s729_s25 = sadd.s32 4, %s1459_s26 }
 0x10b   : > { %s730_s23 = sld [smem:[#allocation5 + %s729_s25]] }
 0x111   : > { %s732_s9 = scalar_lea.vmem %s1568_s6, %s730_s23 }
 0x112   : > { %v748_v21 = vld [vmem:[%s732_s9] sm:$0x1] }
 0x113   : > { %1160 = vst [vmem:[%s1465_s24 + $0x4] sm:$0x1] %v748_v21 }
 0x114   : > { %767 = vsyncadd %s1468_s1, 16  ;;  %s768_s11 = sadd.s32 5, %s1459_s26 }
 0x115   : > { %s769_s12 = sld [smem:[#allocation5 + %s768_s11]] }
 0x11b   : > { %s771_s16 = scalar_lea.vmem %s1568_s6, %s769_s12 }
 0x11c   : > { %v787_v22 = vld [vmem:[%s771_s16] sm:$0x1] }
 0x11d   : > { %1162 = vst [vmem:[%s1465_s24 + $0x5] sm:$0x1] %v787_v22 }
 0x11e   : > { %806 = vsyncadd %s1468_s1, 16  ;;  %s807_s20 = sadd.s32 6, %s1459_s26 }
 0x11f   : > { %s808_s25 = sld [smem:[#allocation5 + %s807_s20]] }
 0x125   : > { %s810_s27 = scalar_lea.vmem %s1568_s6, %s808_s25 }
 0x126   : > { %v826_v23 = vld [vmem:[%s810_s27] sm:$0x1] }
 0x127   : > { %1164 = vst [vmem:[%s1465_s24 + $0x6] sm:$0x1] %v826_v23 }
 0x128   : > { %845 = vsyncadd %s1468_s1, 16  ;;  %s846_s9 = sadd.s32 7, %s1459_s26 }
 0x129   : > { %s847_s11 = sld [smem:[#allocation5 + %s846_s9]] }
 0x12f   : > { %s849_s19 = scalar_lea.vmem %s1568_s6, %s847_s11 }
 0x130   : > { %v865_v24 = vld [vmem:[%s849_s19] sm:$0x1] }
 0x131   : > { %1166 = vst [vmem:[%s1465_s24 + $0x7] sm:$0x1] %v865_v24 }
 0x132   : > { %884 = vsyncadd %s1468_s1, 16 }
 0x133 PF: > { %s1575_s16 = sshll.u32 %s1584_s21, 3  ;;  %vm888_vm2 = vcmask 261120   ;;  %v1308_v30 = vmov 32.0   ;;  %s1168_s1 = sshll.u32 %s1373_s0, 3  ;;  %v1220_v51 = vld [vmem:[%s1566_s4] ss:$0 sm:$0xff] }
 0x134   : > { %s885_s20 = scalar_lea.vmem [#allocation2], %s1575_s16  ;;  %1222 = vrcp.f32 %v1308_v30  ;;  %s942_s23 = scalar_lea.hbm %s1569_s7, %s1168_s1  ;;  %v1221_v54 = vld [vmem:[%s1567_s5] ss:$0 sm:$0xff] }
 0x135   : > { %s1576_s0 = scalar_lea.vmem [#allocation6], %s1404_s17  ;;  %s946_s11 = sshll.u32 %s942_s23, 4  ;;  %s947_s11 = int_to_ptr.hbm [resolvable:$true] %s946_s11 }
 0x136   : > { %s944_s9 = sshll.u32 %s1576_s0, 4  ;;  %s1577_s12 = smov %s1576_s0  ;;  %s945_s9 = int_to_ptr.vmem [resolvable:$true] %s944_s9 }
 0x137   : > { %s1578_s18 = sand.u32 1, %s1296_s29   ;;  %s1252_s16 = sshra.s32 %s947_s11, 4  ;;  %s1253_s16 = int_to_ptr.hbm [resolvable:$true] %s1252_s16 }
 0x138   : > { %v886_v25 = vld [vmem:[%s885_s20] sm:$0xff]  ;;  %s932_s19 = scalar_lea.sflag [#allocation7], %s1578_s18  ;;  %s1254_s20 = scalar_lea.hbm %s1253_s16, 8 }
 0x139   : > { %v887_v26 = vadd.f32 %v886_v25, %v1454_v16  ;;  %p1255_p1 = scmp.ne.s32.totalorder %s1253_s16, %s1254_s20  ;;  %s1258_s24 = scalar_lea.hbm %s1569_s7, 16 }
 0x13a   : > { %v1223_v31 = vpop.eup %1222  ;;  %p1259_p4 = scmp.lt.s32.totalorder %s1253_s16, %s1569_s7  ;;  %p1260_p7 = scmp.lt.s32.totalorder %s1258_s24, %s1254_s20 }
 0x13b   : > { %v889_v27 = vsel %vm888_vm2, %v887_v26, 0.0  ;;  %v900_v28 = vmul.f32 %v887_v26, %v887_v26  ;;  %v893_v32 = vmul.f32 32.0, %v1223_v31  ;;  %vm897_vm3 = vweird.f32 %v1223_v31  ;;  %p1256_p2 = pnand %p1255_p1, %p1390_p5 }
 0x13c   : > { %890 = vadd.xlane.f32.xlu0 %v889_v27  ;;  %p1261_p8 = por %p1260_p7, %p1259_p4 }
 0x13d   : > { %v901_v29 = vsel %vm888_vm2, %v900_v28, 0.0  ;;  %v894_v33 = vsub.f32 1.0, %v893_v32  ;;  %p1257_p3 = pneg %p1256_p2 }
 0x13f   : > { %v895_v34 = vmul.f32 %v1223_v31, %v894_v33  ;;  %p1262_p9 = pnand %p1261_p8, %p1257_p3 }
 0x141   : > { %v896_v35 = vadd.f32 %v1223_v31, %v895_v34 }
 0x143   : > { %v898_v37 = vsel %vm897_vm3, %v1223_v31, %v896_v35 }
 0x144   : > { %902 = vadd.xlane.f32.xlu0 %v901_v29 }
 0x1af   : > { %v891_v36 = vpop.xlane.xlu0 %890 }
 0x1b0   : > { %v899_v38 = vmul.f32 %v898_v37, %v891_v36 }
 0x1b2   : > { %v905_v40 = vmul.f32 %v899_v38, %v899_v38  ;;  %v918_v50 = vsub.f32 %v887_v26, %v899_v38 }
 0x1b7   : > { %v903_v39 = vpop.xlane.xlu0 %902 }
 0x1b8   : > { %v904_v41 = vmul.f32 %v903_v39, %v898_v37 }
 0x1ba   : > { %v906_v42 = vsub.f32 %v904_v41, %v905_v40 }
 0x1bc   : > { %v907_v43 = vadd.f32 1e-05, %v906_v42 }
 0x1be   : > { %1224 = vrsqrt.f32 %v907_v43  ;;  %vm914_vm5 = vweird.f32 %v907_v43 }
 0x1c4   : > { %v1225_v44 = vpop.eup %1224 }
 0x1c5   : > { %v909_v45 = vmul.f32 %v1225_v44, %v907_v43  ;;  %vm915_vm4 = vweird.f32 %v1225_v44 }
 0x1c6   : > { %vm916_vm6 = vmor %vm914_vm5, %vm915_vm4 }
 0x1c7   : > { %v910_v46 = vmul.f32 %v1225_v44, %v909_v45 }
 0x1c9   : > { %v911_v47 = vmul.f32 0.5, %v910_v46 }
 0x1cb   : > { %v912_v48 = vsub.f32 1.5, %v911_v47 }
 0x1cd   : > { %v913_v49 = vmul.f32 %v1225_v44, %v912_v48 }
 0x1cf   : > { %v917_v52 = vsel %vm916_vm6, %v1225_v44, %v913_v49 }
 0x1d0   : > { %v919_v53 = vmul.f32 %v918_v50, %v917_v52 }
 0x1d2   : > { %v924_v55 = vmul.f32 %v1220_v51, %v919_v53 }
 0x1d4   : > { %v929_v56 = vadd.f32 %v1221_v54, %v924_v55 }
 0x1d6   : > { %930 = vst.msk [vmem:[%s1577_s12] sm:$0xff] %vm888_vm2, %v929_v56 }
 0x1d7   : > { %1265 = shalt.err (!%p1262_p9)
}
 0x1d8   : > { %1175 = dma.vmem_to_hbm [thread:$0]  (%p1390_p5), %s945_s9, 128, %s947_s11, %s932_s19  }
 0x1d9 PF: > { %p1181_p10 = scmp.ge.s32.totalorder %s1304_s8, 2  ;;  %s958_s17 = sand.u32 1, %s1292_s28  }
 0x1da   : > { %s959_s23 = scalar_lea.sflag [#allocation7], %s958_s17 }
 0x1db   : > { %p1178_p11 = pnand %p1181_p10, %p1394_p6 }
 0x1dd   : > { %p1179_p12 = pneg %p1178_p11 }
 0x1df   : > { %1287 = dma.done.wait (%p1179_p12), %s959_s23, 128  }
 0x1e0   : > { %1289 = vsyncadd (%p1179_p12), %s959_s23, 4294967168  ;;  %p25_p13 = scmp.ge.s32.totalorder %s1377_s10, 4   ;;  %s1579_s28 = smov %s1296_s29 }
 0x1e1   : > { %s1580_s29 = smov %s1300_s30  ;;  %s1581_s30 = smov %s1388_s13 }
 0x1e2   : > { %s1582_s8 = smov %s1377_s10  ;;  %27 = sbr.rel (!%p25_p13) target bundleno = 9 (0x9), region = 662 }
 0x1e7   :  { %965 = vsyncpa [#allocation7], 1 }
 0x1e8   :  { %967 = vsyncpa [#allocation7 + $0x1], 1 }
 0x1e9   :  { %968 = vsyncmov [#allocation3] }
 0x1ec   :  { %s969_s8 = vpop.sfrf %968 }
 0x1ed   :  { %p1171_p5 = scmp.ne.s32.totalorder %s969_s8, 0 }
 0x1ef   :  { %973 = shalt.err (%p1171_p5)  }
 0x1f0   :  { %975 = vsyncmov [#allocation3 + $0x1] }
 0x1f3   :  { %s976_s14 = vpop.sfrf %975 }
 0x1f4   :  { %p1172_p6 = scmp.ne.s32.totalorder %s976_s14, 0 }
 0x1f6   :  { %980 = shalt.err (%p1172_p6)  }

</bundles_post_ra>
